<compile_context>
chip_gen: v5e
topology: v5e:2x2
jax: 0.10.0
libtpu: 0.0.40
codegen_flags: <defaults>
</compile_context>

<pallas_src>
import functools
import jax
import jax.numpy as jnp
from jax import lax
from jax.experimental import pallas as pl
from jax.experimental.pallas import tpu as pltpu


# dot_general dimension_numbers for A @ B^T (contract the last dim of both operands).
_NT = (((1,), (1,)), ((), ()))


def _attention_kernel(x_ref, ln_w_ref, ln_b_ref, wq_ref, wk_ref, wv_ref,
                      wo_ref, b_out_ref, o_ref, *, heads, eps=1e-5):
    # x_ref: (1, N, D) VMEM tile for one batch element.
    x = x_ref[0].astype(jnp.float32)                         # (N, D) f32 for LN stats
    N, D = x.shape

    # ---- LayerNorm over the channel dim (f32 statistics), matches nn.LayerNorm ----
    mean = jnp.mean(x, axis=-1, keepdims=True)
    xc = x - mean
    var = jnp.mean(xc * xc, axis=-1, keepdims=True)
    xn32 = xc * lax.rsqrt(var + eps) * ln_w_ref[...] + ln_b_ref[...]
    xn = xn32.astype(jnp.bfloat16)                           # bf16 operand for the MXU

    # ---- Per-head attention, accumulated into a lane-dense (N, D) f32 accumulator.
    # Weight refs are (heads, dim_head, D): head slices are leading-axis, the Q/K/V
    # projections and QK^T are NT matmuls, softmax scale is pre-folded into wq.
    acc = jnp.zeros((N, D), jnp.float32)
    for h in range(heads):
        q = lax.dot_general(xn, wq_ref[h], _NT,
                            preferred_element_type=jnp.float32).astype(jnp.bfloat16)
        k = lax.dot_general(xn, wk_ref[h], _NT,
                            preferred_element_type=jnp.float32).astype(jnp.bfloat16)
        v = lax.dot_general(xn, wv_ref[h], _NT,
                            preferred_element_type=jnp.float32).astype(jnp.bfloat16)

        # (N, N) logits; NT form so no explicit k.T / XLU transpose.
        dots = lax.dot_general(q, k, _NT, preferred_element_type=jnp.float32)
        m = jnp.max(dots, axis=-1, keepdims=True)
        p = jnp.exp(dots - m)
        inv = pl.reciprocal(jnp.sum(p, axis=-1, keepdims=True), approx=True)
        attn = (p * inv).astype(jnp.bfloat16)

        o_h = jnp.dot(attn, v, preferred_element_type=jnp.float32).astype(jnp.bfloat16)
        # Fused per-head output projection: (N, dh) @ (dh, D) accumulated into (N, D).
        acc = acc + jnp.dot(o_h, wo_ref[h], preferred_element_type=jnp.float32)

    o_ref[0] = (acc + b_out_ref[...]).astype(o_ref.dtype)


def attention_pallas(x, ln_w, ln_b, w_qkv, w_out, b_out, *, heads, dim_head):
    B, N, D = x.shape
    inner = heads * dim_head
    scale = float(dim_head) ** -0.5

    # Host-side weight repack: (in_features, out_features) -> per-head (heads, dh, D)
    # bf16, with the softmax scale folded into the Q projection.
    def repack(w):                                   # (D, inner) -> (heads, dh, D)
        return jnp.transpose(w.reshape(D, heads, dim_head), (1, 2, 0))

    wq = (repack(w_qkv[:, :inner]) * scale).astype(jnp.bfloat16)
    wk = repack(w_qkv[:, inner:2 * inner]).astype(jnp.bfloat16)
    wv = repack(w_qkv[:, 2 * inner:]).astype(jnp.bfloat16)
    wo = w_out.reshape(heads, dim_head, D).astype(jnp.bfloat16)

    kernel = functools.partial(_attention_kernel, heads=heads)

    return pl.pallas_call(
        kernel,
        out_shape=jax.ShapeDtypeStruct((B, N, D), x.dtype),
        grid_spec=pltpu.PrefetchScalarGridSpec(
            num_scalar_prefetch=0,
            grid=(B,),
            in_specs=[
                pl.BlockSpec((1, N, D), lambda b: (b, 0, 0)),             # x
                pl.BlockSpec((1, D), lambda b: (0, 0)),                   # LN weight
                pl.BlockSpec((1, D), lambda b: (0, 0)),                   # LN bias
                pl.BlockSpec((heads, dim_head, D), lambda b: (0, 0, 0)),  # Wq (scaled)
                pl.BlockSpec((heads, dim_head, D), lambda b: (0, 0, 0)),  # Wk
                pl.BlockSpec((heads, dim_head, D), lambda b: (0, 0, 0)),  # Wv
                pl.BlockSpec((heads, dim_head, D), lambda b: (0, 0, 0)),  # W_out per head
                pl.BlockSpec((1, D), lambda b: (0, 0)),                   # b_out
            ],
            out_specs=pl.BlockSpec((1, N, D), lambda b: (b, 0, 0)),
        ),
        compiler_params=pltpu.CompilerParams(
            dimension_semantics=("parallel",),
            vmem_limit_bytes=32 * 1024 * 1024),
    )(x, ln_w, ln_b, wq, wk, wv, wo, b_out)


def attention_reference(x, ln_w, ln_b, w_qkv, w_out, b_out, *, heads, dim_head):
    """Pure-JAX f32 reference mirroring the PyTorch forward."""
    B, N, D = x.shape
    inner = heads * dim_head
    scale = float(dim_head) ** -0.5
    mean = jnp.mean(x, axis=-1, keepdims=True)
    var = jnp.mean((x - mean) ** 2, axis=-1, keepdims=True)
    xn = (x - mean) / jnp.sqrt(var + 1e-5) * ln_w[0] + ln_b[0]
    qkv = xn @ w_qkv                                        # (B, N, 3*inner)
    q, k, v = jnp.split(qkv, 3, axis=-1)

    def to_heads(t):
        return t.reshape(B, N, heads, dim_head).transpose(0, 2, 1, 3)

    q, k, v = map(to_heads, (q, k, v))
    dots = jnp.einsum('bhnd,bhmd->bhnm', q, k) * scale
    attn = jax.nn.softmax(dots, axis=-1)
    out = jnp.einsum('bhnm,bhmd->bhnd', attn, v)
    out = out.transpose(0, 2, 1, 3).reshape(B, N, inner)
    return out @ w_out + b_out[0]


if __name__ == "__main__":
    # Small shapes consistent with the module: dim=32, heads=4, dim_head=16.
    B, N, D = 2, 8, 32
    heads, dim_head = 4, 16
    inner = heads * dim_head

    key = jax.random.PRNGKey(0)
    kx, kq, ko, kb = jax.random.split(key, 4)

    x = jax.random.normal(kx, (B, N, D), dtype=jnp.float32)
    # Deterministic synthetic parameters (not a checkpoint load).
    ln_w = jnp.ones((1, D), dtype=jnp.float32)
    ln_b = jnp.zeros((1, D), dtype=jnp.float32)
    w_qkv = jax.random.normal(kq, (D, 3 * inner), dtype=jnp.float32) * 0.05   # (in, out)
    w_out = jax.random.normal(ko, (inner, D), dtype=jnp.float32) * 0.05       # (in, out)
    b_out = jax.random.normal(kb, (1, D), dtype=jnp.float32) * 0.01

    out = attention_pallas(x, ln_w, ln_b, w_qkv, w_out, b_out,
                           heads=heads, dim_head=dim_head)
    out = jax.block_until_ready(out)

    ref = attention_reference(x, ln_w, ln_b, w_qkv, w_out, b_out,
                              heads=heads, dim_head=dim_head)
    # bf16 MXU operands + approx softmax reciprocal -> looser tolerance than pure f32.
    assert jnp.allclose(out, ref, atol=2e-2, rtol=2e-2), "mismatch vs reference"

    print("KERNEL_OK")
</pallas_src>

<mosaic_0001>
module attributes {stable_mosaic.version = 11 : i64} {
  func.func @_attention_kernel(%arg0: i32, %arg1: memref<1x8x32xf32, #tpu.memory_space<vmem>>, %arg2: memref<1x32xf32, #tpu.memory_space<vmem>>, %arg3: memref<1x32xf32, #tpu.memory_space<vmem>>, %arg4: memref<4x16x32xbf16, #tpu.memory_space<vmem>>, %arg5: memref<4x16x32xbf16, #tpu.memory_space<vmem>>, %arg6: memref<4x16x32xbf16, #tpu.memory_space<vmem>>, %arg7: memref<4x16x32xbf16, #tpu.memory_space<vmem>>, %arg8: memref<1x32xf32, #tpu.memory_space<vmem>>, %arg9: memref<1x8x32xf32, #tpu.memory_space<vmem>>) attributes {dimension_semantics = [#tpu.dimension_semantics<parallel>], iteration_bounds = array<i64: 2>, scalar_prefetch = 0 : i64, scratch_operands = 0 : i64, tpu.core_type = #tpu.core_type<tc>, window_params = [{transform_indices = @transform_0, window_bounds = array<i64: 1, 8, 32>}, {pipeline_mode = #tpu.pipeline_mode<synchronous>, transform_indices = @transform_1, window_bounds = array<i64: 1, 32>}, {pipeline_mode = #tpu.pipeline_mode<synchronous>, transform_indices = @transform_2, window_bounds = array<i64: 1, 32>}, {pipeline_mode = #tpu.pipeline_mode<synchronous>, transform_indices = @transform_3, window_bounds = array<i64: 4, 16, 32>}, {pipeline_mode = #tpu.pipeline_mode<synchronous>, transform_indices = @transform_4, window_bounds = array<i64: 4, 16, 32>}, {pipeline_mode = #tpu.pipeline_mode<synchronous>, transform_indices = @transform_5, window_bounds = array<i64: 4, 16, 32>}, {pipeline_mode = #tpu.pipeline_mode<synchronous>, transform_indices = @transform_6, window_bounds = array<i64: 4, 16, 32>}, {pipeline_mode = #tpu.pipeline_mode<synchronous>, transform_indices = @transform_7, window_bounds = array<i64: 1, 32>}, {transform_indices = @transform_8, window_bounds = array<i64: 1, 8, 32>}]} {
    %c0 = arith.constant 0 : index
    %c0_0 = arith.constant 0 : index
    %c0_1 = arith.constant 0 : index
    %0 = vector.load %arg1[%c0, %c0_0, %c0_1] : memref<1x8x32xf32, #tpu.memory_space<vmem>>, vector<1x8x32xf32>
    %1 = vector.shape_cast %0 : vector<1x8x32xf32> to vector<8x32xf32>
    %cst = arith.constant dense<0.000000e+00> : vector<8xf32>
    %2 = vector.multi_reduction <add>, %1, %cst [1] : vector<8x32xf32> to vector<8xf32>
    %3 = vector.shape_cast %2 : vector<8xf32> to vector<8x1xf32>
    %cst_2 = arith.constant 3.200000e+01 : f32
    %4 = vector.broadcast %cst_2 : f32 to vector<8x1xf32>
    %5 = arith.divf %3, %4 : vector<8x1xf32>
    %6 = vector.broadcast %5 : vector<8x1xf32> to vector<8x32xf32>
    %7 = arith.subf %1, %6 : vector<8x32xf32>
    %8 = arith.mulf %7, %7 : vector<8x32xf32>
    %cst_3 = arith.constant dense<0.000000e+00> : vector<8xf32>
    %9 = vector.multi_reduction <add>, %8, %cst_3 [1] : vector<8x32xf32> to vector<8xf32>
    %10 = vector.shape_cast %9 : vector<8xf32> to vector<8x1xf32>
    %cst_4 = arith.constant 3.200000e+01 : f32
    %11 = vector.broadcast %cst_4 : f32 to vector<8x1xf32>
    %12 = arith.divf %10, %11 : vector<8x1xf32>
    %cst_5 = arith.constant 9.99999974E-6 : f32
    %13 = vector.broadcast %cst_5 : f32 to vector<8x1xf32>
    %14 = arith.addf %12, %13 : vector<8x1xf32>
    %15 = math.rsqrt %14 : vector<8x1xf32>
    %16 = vector.broadcast %15 : vector<8x1xf32> to vector<8x32xf32>
    %17 = arith.mulf %7, %16 : vector<8x32xf32>
    %c0_6 = arith.constant 0 : index
    %c0_7 = arith.constant 0 : index
    %18 = vector.load %arg2[%c0_6, %c0_7] : memref<1x32xf32, #tpu.memory_space<vmem>>, vector<1x32xf32>
    %19 = vector.broadcast %18 : vector<1x32xf32> to vector<8x32xf32>
    %20 = arith.mulf %17, %19 : vector<8x32xf32>
    %c0_8 = arith.constant 0 : index
    %c0_9 = arith.constant 0 : index
    %21 = vector.load %arg3[%c0_8, %c0_9] : memref<1x32xf32, #tpu.memory_space<vmem>>, vector<1x32xf32>
    %22 = vector.broadcast %21 : vector<1x32xf32> to vector<8x32xf32>
    %23 = arith.addf %20, %22 : vector<8x32xf32>
    %24 = arith.truncf %23 : vector<8x32xf32> to vector<8x32xbf16>
    %cst_10 = arith.constant 0.000000e+00 : f32
    %25 = vector.broadcast %cst_10 : f32 to vector<8x32xf32>
    %c0_11 = arith.constant 0 : index
    %c0_12 = arith.constant 0 : index
    %c0_13 = arith.constant 0 : index
    %26 = vector.load %arg4[%c0_11, %c0_12, %c0_13] : memref<4x16x32xbf16, #tpu.memory_space<vmem>>, vector<1x16x32xbf16>
    %27 = vector.shape_cast %26 : vector<1x16x32xbf16> to vector<16x32xbf16>
    %cst_14 = arith.constant dense<0.000000e+00> : vector<8x16xf32>
    %28 = tpu.matmul %24, %27, %cst_14 {dimension_numbers = #tpu.dot_dimension_numbers<[1], [1], [0], [0], [0, 0, 1, 0], [], []>} : vector<8x32xbf16>, vector<16x32xbf16>, vector<8x16xf32> -> vector<8x16xf32>
    %29 = arith.truncf %28 : vector<8x16xf32> to vector<8x16xbf16>
    %c0_15 = arith.constant 0 : index
    %c0_16 = arith.constant 0 : index
    %c0_17 = arith.constant 0 : index
    %30 = vector.load %arg5[%c0_15, %c0_16, %c0_17] : memref<4x16x32xbf16, #tpu.memory_space<vmem>>, vector<1x16x32xbf16>
    %31 = vector.shape_cast %30 : vector<1x16x32xbf16> to vector<16x32xbf16>
    %cst_18 = arith.constant dense<0.000000e+00> : vector<8x16xf32>
    %32 = tpu.matmul %24, %31, %cst_18 {dimension_numbers = #tpu.dot_dimension_numbers<[1], [1], [0], [0], [0, 0, 1, 0], [], []>} : vector<8x32xbf16>, vector<16x32xbf16>, vector<8x16xf32> -> vector<8x16xf32>
    %33 = arith.truncf %32 : vector<8x16xf32> to vector<8x16xbf16>
    %c0_19 = arith.constant 0 : index
    %c0_20 = arith.constant 0 : index
    %c0_21 = arith.constant 0 : index
    %34 = vector.load %arg6[%c0_19, %c0_20, %c0_21] : memref<4x16x32xbf16, #tpu.memory_space<vmem>>, vector<1x16x32xbf16>
    %35 = vector.shape_cast %34 : vector<1x16x32xbf16> to vector<16x32xbf16>
    %cst_22 = arith.constant dense<0.000000e+00> : vector<8x16xf32>
    %36 = tpu.matmul %24, %35, %cst_22 {dimension_numbers = #tpu.dot_dimension_numbers<[1], [1], [0], [0], [0, 0, 1, 0], [], []>} : vector<8x32xbf16>, vector<16x32xbf16>, vector<8x16xf32> -> vector<8x16xf32>
    %37 = arith.truncf %36 : vector<8x16xf32> to vector<8x16xbf16>
    %cst_23 = arith.constant dense<0.000000e+00> : vector<8x8xf32>
    %38 = tpu.matmul %29, %33, %cst_23 {dimension_numbers = #tpu.dot_dimension_numbers<[1], [1], [0], [0], [0, 0, 1, 0], [], []>} : vector<8x16xbf16>, vector<8x16xbf16>, vector<8x8xf32> -> vector<8x8xf32>
    %cst_24 = arith.constant dense<0xFF800000> : vector<8xf32>
    %39 = vector.multi_reduction <maximumf>, %38, %cst_24 [1] : vector<8x8xf32> to vector<8xf32>
    %40 = vector.shape_cast %39 : vector<8xf32> to vector<8x1xf32>
    %41 = vector.broadcast %40 : vector<8x1xf32> to vector<8x8xf32>
    %42 = arith.subf %38, %41 : vector<8x8xf32>
    %43 = math.exp %42 : vector<8x8xf32>
    %cst_25 = arith.constant dense<0.000000e+00> : vector<8xf32>
    %44 = vector.multi_reduction <add>, %43, %cst_25 [1] : vector<8x8xf32> to vector<8xf32>
    %45 = vector.shape_cast %44 : vector<8xf32> to vector<8x1xf32>
    %46 = tpu.reciprocal %45 {approx = true} : vector<8x1xf32> -> vector<8x1xf32>
    %47 = vector.broadcast %46 : vector<8x1xf32> to vector<8x8xf32>
    %48 = arith.mulf %43, %47 : vector<8x8xf32>
    %49 = arith.truncf %48 : vector<8x8xf32> to vector<8x8xbf16>
    %cst_26 = arith.constant dense<0.000000e+00> : vector<8x16xf32>
    %50 = tpu.matmul %49, %37, %cst_26 {dimension_numbers = #tpu.dot_dimension_numbers<[1], [0], [0], [1], [0, 0, 1, 1], [], []>} : vector<8x8xbf16>, vector<8x16xbf16>, vector<8x16xf32> -> vector<8x16xf32>
    %51 = arith.truncf %50 : vector<8x16xf32> to vector<8x16xbf16>
    %c0_27 = arith.constant 0 : index
    %c0_28 = arith.constant 0 : index
    %c0_29 = arith.constant 0 : index
    %52 = vector.load %arg7[%c0_27, %c0_28, %c0_29] : memref<4x16x32xbf16, #tpu.memory_space<vmem>>, vector<1x16x32xbf16>
    %53 = vector.shape_cast %52 : vector<1x16x32xbf16> to vector<16x32xbf16>
    %cst_30 = arith.constant dense<0.000000e+00> : vector<8x32xf32>
    %54 = tpu.matmul %51, %53, %cst_30 {dimension_numbers = #tpu.dot_dimension_numbers<[1], [0], [0], [1], [0, 0, 1, 1], [], []>} : vector<8x16xbf16>, vector<16x32xbf16>, vector<8x32xf32> -> vector<8x32xf32>
    %55 = arith.addf %25, %54 : vector<8x32xf32>
    %c1 = arith.constant 1 : index
    %c0_31 = arith.constant 0 : index
    %c0_32 = arith.constant 0 : index
    %56 = vector.load %arg4[%c1, %c0_31, %c0_32] : memref<4x16x32xbf16, #tpu.memory_space<vmem>>, vector<1x16x32xbf16>
    %57 = vector.shape_cast %56 : vector<1x16x32xbf16> to vector<16x32xbf16>
    %cst_33 = arith.constant dense<0.000000e+00> : vector<8x16xf32>
    %58 = tpu.matmul %24, %57, %cst_33 {dimension_numbers = #tpu.dot_dimension_numbers<[1], [1], [0], [0], [0, 0, 1, 0], [], []>} : vector<8x32xbf16>, vector<16x32xbf16>, vector<8x16xf32> -> vector<8x16xf32>
    %59 = arith.truncf %58 : vector<8x16xf32> to vector<8x16xbf16>
    %c1_34 = arith.constant 1 : index
    %c0_35 = arith.constant 0 : index
    %c0_36 = arith.constant 0 : index
    %60 = vector.load %arg5[%c1_34, %c0_35, %c0_36] : memref<4x16x32xbf16, #tpu.memory_space<vmem>>, vector<1x16x32xbf16>
    %61 = vector.shape_cast %60 : vector<1x16x32xbf16> to vector<16x32xbf16>
    %cst_37 = arith.constant dense<0.000000e+00> : vector<8x16xf32>
    %62 = tpu.matmul %24, %61, %cst_37 {dimension_numbers = #tpu.dot_dimension_numbers<[1], [1], [0], [0], [0, 0, 1, 0], [], []>} : vector<8x32xbf16>, vector<16x32xbf16>, vector<8x16xf32> -> vector<8x16xf32>
    %63 = arith.truncf %62 : vector<8x16xf32> to vector<8x16xbf16>
    %c1_38 = arith.constant 1 : index
    %c0_39 = arith.constant 0 : index
    %c0_40 = arith.constant 0 : index
    %64 = vector.load %arg6[%c1_38, %c0_39, %c0_40] : memref<4x16x32xbf16, #tpu.memory_space<vmem>>, vector<1x16x32xbf16>
    %65 = vector.shape_cast %64 : vector<1x16x32xbf16> to vector<16x32xbf16>
    %cst_41 = arith.constant dense<0.000000e+00> : vector<8x16xf32>
    %66 = tpu.matmul %24, %65, %cst_41 {dimension_numbers = #tpu.dot_dimension_numbers<[1], [1], [0], [0], [0, 0, 1, 0], [], []>} : vector<8x32xbf16>, vector<16x32xbf16>, vector<8x16xf32> -> vector<8x16xf32>
    %67 = arith.truncf %66 : vector<8x16xf32> to vector<8x16xbf16>
    %cst_42 = arith.constant dense<0.000000e+00> : vector<8x8xf32>
    %68 = tpu.matmul %59, %63, %cst_42 {dimension_numbers = #tpu.dot_dimension_numbers<[1], [1], [0], [0], [0, 0, 1, 0], [], []>} : vector<8x16xbf16>, vector<8x16xbf16>, vector<8x8xf32> -> vector<8x8xf32>
    %cst_43 = arith.constant dense<0xFF800000> : vector<8xf32>
    %69 = vector.multi_reduction <maximumf>, %68, %cst_43 [1] : vector<8x8xf32> to vector<8xf32>
    %70 = vector.shape_cast %69 : vector<8xf32> to vector<8x1xf32>
    %71 = vector.broadcast %70 : vector<8x1xf32> to vector<8x8xf32>
    %72 = arith.subf %68, %71 : vector<8x8xf32>
    %73 = math.exp %72 : vector<8x8xf32>
    %cst_44 = arith.constant dense<0.000000e+00> : vector<8xf32>
    %74 = vector.multi_reduction <add>, %73, %cst_44 [1] : vector<8x8xf32> to vector<8xf32>
    %75 = vector.shape_cast %74 : vector<8xf32> to vector<8x1xf32>
    %76 = tpu.reciprocal %75 {approx = true} : vector<8x1xf32> -> vector<8x1xf32>
    %77 = vector.broadcast %76 : vector<8x1xf32> to vector<8x8xf32>
    %78 = arith.mulf %73, %77 : vector<8x8xf32>
    %79 = arith.truncf %78 : vector<8x8xf32> to vector<8x8xbf16>
    %cst_45 = arith.constant dense<0.000000e+00> : vector<8x16xf32>
    %80 = tpu.matmul %79, %67, %cst_45 {dimension_numbers = #tpu.dot_dimension_numbers<[1], [0], [0], [1], [0, 0, 1, 1], [], []>} : vector<8x8xbf16>, vector<8x16xbf16>, vector<8x16xf32> -> vector<8x16xf32>
    %81 = arith.truncf %80 : vector<8x16xf32> to vector<8x16xbf16>
    %c1_46 = arith.constant 1 : index
    %c0_47 = arith.constant 0 : index
    %c0_48 = arith.constant 0 : index
    %82 = vector.load %arg7[%c1_46, %c0_47, %c0_48] : memref<4x16x32xbf16, #tpu.memory_space<vmem>>, vector<1x16x32xbf16>
    %83 = vector.shape_cast %82 : vector<1x16x32xbf16> to vector<16x32xbf16>
    %cst_49 = arith.constant dense<0.000000e+00> : vector<8x32xf32>
    %84 = tpu.matmul %81, %83, %cst_49 {dimension_numbers = #tpu.dot_dimension_numbers<[1], [0], [0], [1], [0, 0, 1, 1], [], []>} : vector<8x16xbf16>, vector<16x32xbf16>, vector<8x32xf32> -> vector<8x32xf32>
    %85 = arith.addf %55, %84 : vector<8x32xf32>
    %c2 = arith.constant 2 : index
    %c0_50 = arith.constant 0 : index
    %c0_51 = arith.constant 0 : index
    %86 = vector.load %arg4[%c2, %c0_50, %c0_51] : memref<4x16x32xbf16, #tpu.memory_space<vmem>>, vector<1x16x32xbf16>
    %87 = vector.shape_cast %86 : vector<1x16x32xbf16> to vector<16x32xbf16>
    %cst_52 = arith.constant dense<0.000000e+00> : vector<8x16xf32>
    %88 = tpu.matmul %24, %87, %cst_52 {dimension_numbers = #tpu.dot_dimension_numbers<[1], [1], [0], [0], [0, 0, 1, 0], [], []>} : vector<8x32xbf16>, vector<16x32xbf16>, vector<8x16xf32> -> vector<8x16xf32>
    %89 = arith.truncf %88 : vector<8x16xf32> to vector<8x16xbf16>
    %c2_53 = arith.constant 2 : index
    %c0_54 = arith.constant 0 : index
    %c0_55 = arith.constant 0 : index
    %90 = vector.load %arg5[%c2_53, %c0_54, %c0_55] : memref<4x16x32xbf16, #tpu.memory_space<vmem>>, vector<1x16x32xbf16>
    %91 = vector.shape_cast %90 : vector<1x16x32xbf16> to vector<16x32xbf16>
    %cst_56 = arith.constant dense<0.000000e+00> : vector<8x16xf32>
    %92 = tpu.matmul %24, %91, %cst_56 {dimension_numbers = #tpu.dot_dimension_numbers<[1], [1], [0], [0], [0, 0, 1, 0], [], []>} : vector<8x32xbf16>, vector<16x32xbf16>, vector<8x16xf32> -> vector<8x16xf32>
    %93 = arith.truncf %92 : vector<8x16xf32> to vector<8x16xbf16>
    %c2_57 = arith.constant 2 : index
    %c0_58 = arith.constant 0 : index
    %c0_59 = arith.constant 0 : index
    %94 = vector.load %arg6[%c2_57, %c0_58, %c0_59] : memref<4x16x32xbf16, #tpu.memory_space<vmem>>, vector<1x16x32xbf16>
    %95 = vector.shape_cast %94 : vector<1x16x32xbf16> to vector<16x32xbf16>
    %cst_60 = arith.constant dense<0.000000e+00> : vector<8x16xf32>
    %96 = tpu.matmul %24, %95, %cst_60 {dimension_numbers = #tpu.dot_dimension_numbers<[1], [1], [0], [0], [0, 0, 1, 0], [], []>} : vector<8x32xbf16>, vector<16x32xbf16>, vector<8x16xf32> -> vector<8x16xf32>
    %97 = arith.truncf %96 : vector<8x16xf32> to vector<8x16xbf16>
    %cst_61 = arith.constant dense<0.000000e+00> : vector<8x8xf32>
    %98 = tpu.matmul %89, %93, %cst_61 {dimension_numbers = #tpu.dot_dimension_numbers<[1], [1], [0], [0], [0, 0, 1, 0], [], []>} : vector<8x16xbf16>, vector<8x16xbf16>, vector<8x8xf32> -> vector<8x8xf32>
    %cst_62 = arith.constant dense<0xFF800000> : vector<8xf32>
    %99 = vector.multi_reduction <maximumf>, %98, %cst_62 [1] : vector<8x8xf32> to vector<8xf32>
    %100 = vector.shape_cast %99 : vector<8xf32> to vector<8x1xf32>
    %101 = vector.broadcast %100 : vector<8x1xf32> to vector<8x8xf32>
    %102 = arith.subf %98, %101 : vector<8x8xf32>
    %103 = math.exp %102 : vector<8x8xf32>
    %cst_63 = arith.constant dense<0.000000e+00> : vector<8xf32>
    %104 = vector.multi_reduction <add>, %103, %cst_63 [1] : vector<8x8xf32> to vector<8xf32>
    %105 = vector.shape_cast %104 : vector<8xf32> to vector<8x1xf32>
    %106 = tpu.reciprocal %105 {approx = true} : vector<8x1xf32> -> vector<8x1xf32>
    %107 = vector.broadcast %106 : vector<8x1xf32> to vector<8x8xf32>
    %108 = arith.mulf %103, %107 : vector<8x8xf32>
    %109 = arith.truncf %108 : vector<8x8xf32> to vector<8x8xbf16>
    %cst_64 = arith.constant dense<0.000000e+00> : vector<8x16xf32>
    %110 = tpu.matmul %109, %97, %cst_64 {dimension_numbers = #tpu.dot_dimension_numbers<[1], [0], [0], [1], [0, 0, 1, 1], [], []>} : vector<8x8xbf16>, vector<8x16xbf16>, vector<8x16xf32> -> vector<8x16xf32>
    %111 = arith.truncf %110 : vector<8x16xf32> to vector<8x16xbf16>
    %c2_65 = arith.constant 2 : index
    %c0_66 = arith.constant 0 : index
    %c0_67 = arith.constant 0 : index
    %112 = vector.load %arg7[%c2_65, %c0_66, %c0_67] : memref<4x16x32xbf16, #tpu.memory_space<vmem>>, vector<1x16x32xbf16>
    %113 = vector.shape_cast %112 : vector<1x16x32xbf16> to vector<16x32xbf16>
    %cst_68 = arith.constant dense<0.000000e+00> : vector<8x32xf32>
    %114 = tpu.matmul %111, %113, %cst_68 {dimension_numbers = #tpu.dot_dimension_numbers<[1], [0], [0], [1], [0, 0, 1, 1], [], []>} : vector<8x16xbf16>, vector<16x32xbf16>, vector<8x32xf32> -> vector<8x32xf32>
    %115 = arith.addf %85, %114 : vector<8x32xf32>
    %c3 = arith.constant 3 : index
    %c0_69 = arith.constant 0 : index
    %c0_70 = arith.constant 0 : index
    %116 = vector.load %arg4[%c3, %c0_69, %c0_70] : memref<4x16x32xbf16, #tpu.memory_space<vmem>>, vector<1x16x32xbf16>
    %117 = vector.shape_cast %116 : vector<1x16x32xbf16> to vector<16x32xbf16>
    %cst_71 = arith.constant dense<0.000000e+00> : vector<8x16xf32>
    %118 = tpu.matmul %24, %117, %cst_71 {dimension_numbers = #tpu.dot_dimension_numbers<[1], [1], [0], [0], [0, 0, 1, 0], [], []>} : vector<8x32xbf16>, vector<16x32xbf16>, vector<8x16xf32> -> vector<8x16xf32>
    %119 = arith.truncf %118 : vector<8x16xf32> to vector<8x16xbf16>
    %c3_72 = arith.constant 3 : index
    %c0_73 = arith.constant 0 : index
    %c0_74 = arith.constant 0 : index
    %120 = vector.load %arg5[%c3_72, %c0_73, %c0_74] : memref<4x16x32xbf16, #tpu.memory_space<vmem>>, vector<1x16x32xbf16>
    %121 = vector.shape_cast %120 : vector<1x16x32xbf16> to vector<16x32xbf16>
    %cst_75 = arith.constant dense<0.000000e+00> : vector<8x16xf32>
    %122 = tpu.matmul %24, %121, %cst_75 {dimension_numbers = #tpu.dot_dimension_numbers<[1], [1], [0], [0], [0, 0, 1, 0], [], []>} : vector<8x32xbf16>, vector<16x32xbf16>, vector<8x16xf32> -> vector<8x16xf32>
    %123 = arith.truncf %122 : vector<8x16xf32> to vector<8x16xbf16>
    %c3_76 = arith.constant 3 : index
    %c0_77 = arith.constant 0 : index
    %c0_78 = arith.constant 0 : index
    %124 = vector.load %arg6[%c3_76, %c0_77, %c0_78] : memref<4x16x32xbf16, #tpu.memory_space<vmem>>, vector<1x16x32xbf16>
    %125 = vector.shape_cast %124 : vector<1x16x32xbf16> to vector<16x32xbf16>
    %cst_79 = arith.constant dense<0.000000e+00> : vector<8x16xf32>
    %126 = tpu.matmul %24, %125, %cst_79 {dimension_numbers = #tpu.dot_dimension_numbers<[1], [1], [0], [0], [0, 0, 1, 0], [], []>} : vector<8x32xbf16>, vector<16x32xbf16>, vector<8x16xf32> -> vector<8x16xf32>
    %127 = arith.truncf %126 : vector<8x16xf32> to vector<8x16xbf16>
    %cst_80 = arith.constant dense<0.000000e+00> : vector<8x8xf32>
    %128 = tpu.matmul %119, %123, %cst_80 {dimension_numbers = #tpu.dot_dimension_numbers<[1], [1], [0], [0], [0, 0, 1, 0], [], []>} : vector<8x16xbf16>, vector<8x16xbf16>, vector<8x8xf32> -> vector<8x8xf32>
    %cst_81 = arith.constant dense<0xFF800000> : vector<8xf32>
    %129 = vector.multi_reduction <maximumf>, %128, %cst_81 [1] : vector<8x8xf32> to vector<8xf32>
    %130 = vector.shape_cast %129 : vector<8xf32> to vector<8x1xf32>
    %131 = vector.broadcast %130 : vector<8x1xf32> to vector<8x8xf32>
    %132 = arith.subf %128, %131 : vector<8x8xf32>
    %133 = math.exp %132 : vector<8x8xf32>
    %cst_82 = arith.constant dense<0.000000e+00> : vector<8xf32>
    %134 = vector.multi_reduction <add>, %133, %cst_82 [1] : vector<8x8xf32> to vector<8xf32>
    %135 = vector.shape_cast %134 : vector<8xf32> to vector<8x1xf32>
    %136 = tpu.reciprocal %135 {approx = true} : vector<8x1xf32> -> vector<8x1xf32>
    %137 = vector.broadcast %136 : vector<8x1xf32> to vector<8x8xf32>
    %138 = arith.mulf %133, %137 : vector<8x8xf32>
    %139 = arith.truncf %138 : vector<8x8xf32> to vector<8x8xbf16>
    %cst_83 = arith.constant dense<0.000000e+00> : vector<8x16xf32>
    %140 = tpu.matmul %139, %127, %cst_83 {dimension_numbers = #tpu.dot_dimension_numbers<[1], [0], [0], [1], [0, 0, 1, 1], [], []>} : vector<8x8xbf16>, vector<8x16xbf16>, vector<8x16xf32> -> vector<8x16xf32>
    %141 = arith.truncf %140 : vector<8x16xf32> to vector<8x16xbf16>
    %c3_84 = arith.constant 3 : index
    %c0_85 = arith.constant 0 : index
    %c0_86 = arith.constant 0 : index
    %142 = vector.load %arg7[%c3_84, %c0_85, %c0_86] : memref<4x16x32xbf16, #tpu.memory_space<vmem>>, vector<1x16x32xbf16>
    %143 = vector.shape_cast %142 : vector<1x16x32xbf16> to vector<16x32xbf16>
    %cst_87 = arith.constant dense<0.000000e+00> : vector<8x32xf32>
    %144 = tpu.matmul %141, %143, %cst_87 {dimension_numbers = #tpu.dot_dimension_numbers<[1], [0], [0], [1], [0, 0, 1, 1], [], []>} : vector<8x16xbf16>, vector<16x32xbf16>, vector<8x32xf32> -> vector<8x32xf32>
    %145 = arith.addf %115, %144 : vector<8x32xf32>
    %c0_88 = arith.constant 0 : index
    %c0_89 = arith.constant 0 : index
    %146 = vector.load %arg8[%c0_88, %c0_89] : memref<1x32xf32, #tpu.memory_space<vmem>>, vector<1x32xf32>
    %147 = vector.broadcast %146 : vector<1x32xf32> to vector<8x32xf32>
    %148 = arith.addf %145, %147 : vector<8x32xf32>
    %c0_90 = arith.constant 0 : index
    %c0_91 = arith.constant 0 : index
    %c0_92 = arith.constant 0 : index
    %149 = vector.load %arg9[%c0_90, %c0_91, %c0_92] : memref<1x8x32xf32, #tpu.memory_space<vmem>>, vector<1x8x32xf32>
    %150 = vector.shape_cast %149 : vector<1x8x32xf32> to vector<8x32xf32>
    %151 = vector.shape_cast %148 : vector<8x32xf32> to vector<1x8x32xf32>
    tpu.vector_store %arg9[%c0_90, %c0_91, %c0_92], %151 {strides = array<i32>} : memref<1x8x32xf32, #tpu.memory_space<vmem>>, vector<1x8x32xf32>,
    return
  }
  func.func @transform_0(%arg0: i32) -> (i32, i32, i32) {
    %c0_i32 = arith.constant 0 : i32
    %c0_i32_0 = arith.constant 0 : i32
    %c0_i32_1 = arith.constant 0 : i32
    return %arg0, %c0_i32, %c0_i32_0 : i32, i32, i32
  }
  func.func @transform_1(%arg0: i32) -> (i32, i32) {
    %c0_i32 = arith.constant 0 : i32
    %c0_i32_0 = arith.constant 0 : i32
    %c0_i32_1 = arith.constant 0 : i32
    return %c0_i32, %c0_i32_0 : i32, i32
  }
  func.func @transform_2(%arg0: i32) -> (i32, i32) {
    %c0_i32 = arith.constant 0 : i32
    %c0_i32_0 = arith.constant 0 : i32
    %c0_i32_1 = arith.constant 0 : i32
    return %c0_i32, %c0_i32_0 : i32, i32
  }
  func.func @transform_3(%arg0: i32) -> (i32, i32, i32) {
    %c0_i32 = arith.constant 0 : i32
    %c0_i32_0 = arith.constant 0 : i32
    %c0_i32_1 = arith.constant 0 : i32
    %c0_i32_2 = arith.constant 0 : i32
    return %c0_i32, %c0_i32_0, %c0_i32_1 : i32, i32, i32
  }
  func.func @transform_4(%arg0: i32) -> (i32, i32, i32) {
    %c0_i32 = arith.constant 0 : i32
    %c0_i32_0 = arith.constant 0 : i32
    %c0_i32_1 = arith.constant 0 : i32
    %c0_i32_2 = arith.constant 0 : i32
    return %c0_i32, %c0_i32_0, %c0_i32_1 : i32, i32, i32
  }
  func.func @transform_5(%arg0: i32) -> (i32, i32, i32) {
    %c0_i32 = arith.constant 0 : i32
    %c0_i32_0 = arith.constant 0 : i32
    %c0_i32_1 = arith.constant 0 : i32
    %c0_i32_2 = arith.constant 0 : i32
    return %c0_i32, %c0_i32_0, %c0_i32_1 : i32, i32, i32
  }
  func.func @transform_6(%arg0: i32) -> (i32, i32, i32) {
    %c0_i32 = arith.constant 0 : i32
    %c0_i32_0 = arith.constant 0 : i32
    %c0_i32_1 = arith.constant 0 : i32
    %c0_i32_2 = arith.constant 0 : i32
    return %c0_i32, %c0_i32_0, %c0_i32_1 : i32, i32, i32
  }
  func.func @transform_7(%arg0: i32) -> (i32, i32) {
    %c0_i32 = arith.constant 0 : i32
    %c0_i32_0 = arith.constant 0 : i32
    %c0_i32_1 = arith.constant 0 : i32
    return %c0_i32, %c0_i32_0 : i32, i32
  }
  func.func @transform_8(%arg0: i32) -> (i32, i32, i32) {
    %c0_i32 = arith.constant 0 : i32
    %c0_i32_0 = arith.constant 0 : i32
    %c0_i32_1 = arith.constant 0 : i32
    return %arg0, %c0_i32, %c0_i32_0 : i32, i32, i32
  }
}

</mosaic_0001>

<bundles_post_ra>
// kernel: tpu_custom_call.1
= control target key start
LH: loop header
LB: loop body
LE: loop exit
PB: predicated region body
PF: predicated region fallthrough
CT: control target
= control target key end

     0   :  { %s2009_s0 = inlined_call_operand.hbm [shape: f32[2,8,32], index: 0, kind: input, shape index: {}]   ;;  %s2010_s1 = inlined_call_operand.hbm [shape: f32[1,32], index: 1, kind: input, shape index: {}]   ;;  %s2011_s2 = inlined_call_operand.vmem [shape: f32[1,32], index: 2, kind: input, shape index: {}]   ;;  %s2012_s3 = inlined_call_operand.hbm [shape: bf16[4,16,32], index: 3, kind: input, shape index: {}]   ;;  %s2013_s4 = inlined_call_operand.hbm [shape: bf16[4,16,32], index: 4, kind: input, shape index: {}]   ;;  %s2014_s5 = inlined_call_operand.hbm [shape: bf16[4,16,32], index: 5, kind: input, shape index: {}]   ;;  %s2015_s6 = inlined_call_operand.hbm [shape: bf16[4,16,32], index: 6, kind: input, shape index: {}]   ;;  %s2016_s7 = inlined_call_operand.vmem [shape: f32[1,32], index: 7, kind: input, shape index: {}]   ;;  %s2017_s8 = inlined_call_operand.hbm [shape: f32[2,8,32], index: 8, kind: output, shape index: {}]  }
   0x1   :  { %2018 = sst [smem:[#allocation19_spill]] %s2010_s1 }
   0x2   :  { %2019 = sst [smem:[#allocation20_spill]] %s2012_s3 }
   0x3   :  { %13 = vsyncpa [#allocation3], 0 }
   0x4   :  { %15 = vsyncpa [#allocation3 + $0x1], 0 }
   0x5   :  { %16 = vsyncpa [#allocation6], 0 }
   0x6   :  { %17 = vsyncpa [#allocation9], 0 }
   0x7   :  { %18 = vsyncpa [#allocation12], 0 }
   0x8   :  { %19 = vsyncpa [#allocation4], 0 }
   0x9   :  { %21 = vsyncpa [#allocation4 + $0x1], 0  ;;  %s1757_s27 = smov 0   ;;  %s1759_s28 = smov 0  }
   0xa   :  { %s1761_s29 = smov 0   ;;  %s1763_s30 = smov 0  }
   0xb LB: > { %s2020_s1 = sld [smem:[#allocation19_spill]]  ;;  %s1781_s12 = sadd.s32 4294967295, %s1702_s30   ;;  %s1702_s30 = sphi %s1763_s30, %s2032_s30   ;;  %s1698_s29 = sphi %s1761_s29, %s2031_s29   ;;  %s1694_s28 = sphi %s1759_s28, %s2030_s28   ;;  %s1690_s27 = sphi %s1757_s27, %s2029_s27  }
   0xc   : > { %p1196_p0 = scmp.ge.s32.totalorder %s1702_s30, 1  ;;  %p48_p1 = scmp.eq.s32.totalorder %s1781_s12, 0 }
   0xd   : > { %p231_p2 = scmp.lt.s32.totalorder %s1702_s30, 3  ;;  %s1704_s14 = smov [#allocation5]  }
   0xe   : > { %s245_s15 = sshll.u32 %s1704_s14, 4  ;;  %s271_s18 = sshll.u32 %s2013_s4, 4  ;;  %s246_s15 = int_to_ptr.vmem [resolvable:$true] %s245_s15  ;;  %s272_s18 = int_to_ptr.hbm [resolvable:$true] %s271_s18 }
   0xf   : > { %p1786_p3 = pnand %p1196_p0, %p231_p2  ;;  %s2023_s3 = sld [smem:[#allocation20_spill]] }
  0x10   : > { %s1705_s23 = smov [#allocation8]   ;;  %s1706_s25 = smov 64  }
  0x11   : > { %s243_s11 = sshll.u32 %s2020_s1, 4  ;;  %p1345_p5 = pneg %p1786_p3  ;;  %s244_s11 = int_to_ptr.hbm [resolvable:$true] %s243_s11 }
  0x12   : > { %s273_s24 = sshll.u32 %s1705_s23, 4  ;;  %s1707_s26 = smov 4   ;;  %s274_s24 = int_to_ptr.vmem [resolvable:$true] %s273_s24 }
  0x13   : > { %p1798_p6 = pnand %p1345_p5, %p48_p1  ;;  %s285_s14 = sshll.u32 %s2014_s5, 4  ;;  %s286_s14 = int_to_ptr.hbm [resolvable:$true] %s285_s14 }
  0x14   : > { %s1708_s16 = smov [#allocation7]   ;;  %s299_s21 = sshll.u32 %s2015_s6, 4  ;;  %s300_s21 = int_to_ptr.hbm [resolvable:$true] %s299_s21 }
  0x15   : > { %s257_s22 = sshll.u32 %s2023_s3, 4  ;;  %s259_s17 = sshll.u32 %s1708_s16, 4  ;;  %s258_s22 = int_to_ptr.hbm [resolvable:$true] %s257_s22  ;;  %s260_s17 = int_to_ptr.vmem [resolvable:$true] %s259_s17 }
  0x16   : > { %1348 = dma.hbm_to_vmem [thread:$0]  (!%p1798_p6), %s244_s11, 16, %s246_s15, [#allocation6]  }
  0x17   : > { %1354 = dma.hbm_to_vmem [thread:$0]  (!%p1798_p6), %s272_s18, 512, %s274_s24, [#allocation9], %s1706_s25, %s1706_s25, %s1707_s26  }
  0x18   : > { %1351 = dma.hbm_to_vmem [thread:$0]  (!%p1798_p6), %s258_s22, 512, %s260_s17, [#allocation6], %s1706_s25, %s1706_s25, %s1707_s26  }
  0x19   : > { %s1709_s11 = smov [#allocation10]   ;;  %s1710_s23 = smov [#allocation11]  }
  0x1a   : > { %s287_s15 = sshll.u32 %s1709_s11, 4  ;;  %s301_s24 = sshll.u32 %s1710_s23, 4  ;;  %s288_s15 = int_to_ptr.vmem [resolvable:$true] %s287_s15  ;;  %s302_s24 = int_to_ptr.vmem [resolvable:$true] %s301_s24 }
  0x1b   : > { %1357 = dma.hbm_to_vmem [thread:$0]  (!%p1798_p6), %s286_s14, 512, %s288_s15, [#allocation9], %s1706_s25, %s1706_s25, %s1707_s26  }
  0x1c   : > { %1360 = dma.hbm_to_vmem [thread:$0]  (!%p1798_p6), %s300_s21, 512, %s302_s24, [#allocation12], %s1706_s25, %s1706_s25, %s1707_s26  }
  0x1d   : > { %s1195_s22 = sadd.s32 4294967294, %s1702_s30   ;;  %s1823_s9 = sadd.s32 1, %s1702_s30  }
  0x1e   : > { %s34_s10 = sadd.s32 1, %s1698_s29  ;;  %s31_s16 = ssub.s32 %s1702_s30, %s1823_s9 }
  0x1f   : > { %p41_p7 = scmp.ne.s32.totalorder %s1698_s29, %s1694_s28  ;;  %p32_p8 = scmp.eq.s32.totalorder %s31_s16, 0 }
  0x20   : > { %p42_p9 = scmp.eq.s32.totalorder %s1702_s30, 0  ;;  %p47_p10 = scmp.ne.s32.totalorder %s1694_s28, %s1690_s27 }
  0x21   : > { %p218_p11 = scmp.eq.s32.totalorder %s1781_s12, 1  ;;  %p224_p0 = scmp.eq.s32.totalorder %s1195_s22, 1 }
  0x22   : > { %s1835_s14 = scalar_select %p32_p8, %s1698_s29, %s34_s10  }
  0x23   : > { %p1839_p12 = por %p48_p1, %p47_p10  ;;  %p1843_p13 = por %p218_p11, %p41_p7 }
  0x24   : > { %p43_p2 = por %p42_p9, %p41_p7  ;;  %s318_s26 = sand.u32 1, %s1698_s29  }
  0x25   : > { %p1848_p5 = por %p224_p0, %p47_p10  ;;  %p1374_p6 = scmp.lt.s32.totalorder %s1702_s30, 2 }
  0x26   : > { %s1203_s11 = sshll.u32 %s318_s26, 3  ;;  %s1204_s15 = sshll.u32 %s1702_s30, 3 }
  0x27   : > { %s326_s21 = scalar_lea.hbm %s2009_s0, %s1204_s15  ;;  %s322_s24 = scalar_lea.vmem [#allocation2], %s1203_s11 }
  0x28   : > { %s328_s23 = sshll.u32 %s326_s21, 4  ;;  %s330_s10 = sshll.u32 %s322_s24, 4  ;;  %s329_s23 = int_to_ptr.hbm [resolvable:$true] %s328_s23  ;;  %s331_s10 = int_to_ptr.vmem [resolvable:$true] %s330_s10 }
  0x29   : > { %p1857_p8 = pnand %p1374_p6, %p43_p2  ;;  %s319_s16 = scalar_lea.sflag [#allocation3], %s318_s26 }
  0x2a   : > { %s1594_s1 = sshra.s32 %s329_s23, 4  ;;  %s1601_s11 = scalar_lea.hbm %s2009_s0, 16  ;;  %s1595_s1 = int_to_ptr.hbm [resolvable:$true] %s1594_s1 }
  0x2b   : > { %s1596_s3 = scalar_lea.hbm %s1595_s1, 8  ;;  %p1598_p9 = pneg %p1857_p8 }
  0x2c   : > { %p1597_p7 = scmp.ne.s32.totalorder %s1595_s1, %s1596_s3  ;;  %p1602_p0 = scmp.lt.s32.totalorder %s1595_s1, %s2009_s0 }
  0x2d   : > { %p1603_p2 = scmp.lt.s32.totalorder %s1601_s11, %s1596_s3 }
  0x2e   : > { %p1599_p10 = pnand %p1598_p9, %p1597_p7 }
  0x2f   : > { %p1604_p6 = por %p1603_p2, %p1602_p0 }
  0x30   : > { %p1600_p11 = pneg %p1599_p10 }
  0x32   : > { %p1605_p4 = pnand %p1604_p6, %p1600_p11 }
  0x34   : > { %1608 = shalt.err (!%p1605_p4)
}
  0x35   : > { %1364 = dma.hbm_to_vmem [thread:$0]  (!%p1857_p8), %s329_s23, 128, %s331_s10, %s319_s16  }
  0x36   : > { %339 = sbr.rel (%p1786_p3) target bundleno = 2599 (0xa27), region = 52  ;;  %s1874_s26 = sand.u32 (!%p1786_p3), 1, %s1694_s28  }
  0x37   : > { %s1206_s24 = sshll.u32 (!%p1786_p3), %s1874_s26, 3  ;;  %s342_s15 = scalar_lea.sflag (!%p1786_p3), [#allocation3], %s1874_s26 }
  0x38   : > { %s345_s1 = scalar_lea.vmem (!%p1786_p3), [#allocation2], %s1206_s24 }
  0x3b   : > { %1669 = dma.done.wait (%p1839_p12), %s342_s15, 128  }
  0x3c   : > { %1671 = vsyncadd (%p1839_p12), %s342_s15, 4294967168 }
  0x3d   : > { %1673 = dma.done.wait (%p48_p1), [#allocation6], 528  }
  0x3e   : > { %1675 = vsyncadd (%p48_p1), [#allocation6], 4294966768 }
  0x3f   : > { %1677 = dma.done.wait (%p48_p1), [#allocation9], 1024  }
  0x40   : > { %1679 = vsyncadd (%p48_p1), [#allocation9], 4294966272 }
  0x41   : > { %1681 = dma.done.wait (%p48_p1), [#allocation12], 512  }
  0x42   : > { %1683 = vsyncadd (%p48_p1), [#allocation12], 4294966784  ;;  %vm406_vm0 = vcmask 261120   ;;  %v405_v0 = vld [vmem:[%s345_s1] sm:$0xff]  ;;  %v1711_v2 = vmov 32.0   ;;  %v1305_v14 = vld [vmem:[#allocation7] sm:$0xff] }
  0x43   : > { %v407_v1 = vsel %vm406_vm0, %v405_v0, 0.0  ;;  %1424 = vrcp.f32 %v1711_v2  ;;  %v1306_v15 = vld [vmem:[#allocation8] sm:$0xff]  ;;  %v458_v17 = vsel %vm406_vm0, %v1305_v14, 0  ;;  %v1309_v21 = vld [vmem:[#allocation7 + $0x8] sm:$0xff]  ;;  %v1421_v33 = vld [vmem:[#allocation5] ss:$0 sm:$0xff] }
  0x44   : > { %408 = vadd.xlane.f32.xlu0 %v407_v1  ;;  %v1307_v16 = vld [vmem:[#allocation10] sm:$0xff]  ;;  %v482_v18 = vsel %vm406_vm0, %v1306_v15, 0  ;;  %467 = vmatpush.bf16.xpose.msra.mxu0 %v458_v17  ;;  %v1310_v22 = vld [vmem:[#allocation8 + $0x8] sm:$0xff]  ;;  %v587_v24 = vsel %vm406_vm0, %v1309_v21, 0  ;;  %vm522_vm5 = vcmask 130048   ;;  %vm558_vm6 = vcmask 1043456  }
  0x45   : > { %v506_v19 = vsel %vm406_vm0, %v1307_v16, 0  ;;  %491 = vmatpush.bf16.xpose.msra.mxu1 %v482_v18  ;;  %v612_v25 = vsel %vm406_vm0, %v1310_v22, 0  ;;  %v1422_v35 = vld [vmem:[%s2011_s2] ss:$0 sm:$0xff]  ;;  %vm542_vm7 = vcmask 64512   ;;  %v1308_v14 = vld [vmem:[#allocation11] sm:$0xff] }
  0x46   : > { %515 = vmatpush.bf16.xpose.msra.mxu2 %v506_v19  ;;  %v1311_v40 = vld [vmem:[#allocation10 + $0x8] sm:$0xff]  ;;  %s1302_s19 = sshll.u32 %s1781_s12, 3  ;;  %s403_s11 = scalar_lea.vmem [#allocation13], %s1206_s24 }
  0x47   : > { %v637_v44 = vsel %vm406_vm0, %v1311_v40, 0  ;;  %v1317_v40 = vld [vmem:[#allocation7 + $0x18] sm:$0xff]  ;;  %s1072_s22 = scalar_lea.hbm %s2017_s8, %s1302_s19  ;;  %s1074_s20 = sshll.u32 %s403_s11, 4  ;;  %s1075_s20 = int_to_ptr.vmem [resolvable:$true] %s1074_s20 }
  0x48   : > { %s1076_s21 = sshll.u32 %s1072_s22, 4  ;;  %s1062_s12 = scalar_lea.sflag [#allocation4], %s1874_s26  ;;  %s1077_s21 = int_to_ptr.hbm [resolvable:$true] %s1076_s21 }
  0x49   : > { %v1425_v3 = vpop.eup %1424  ;;  %s1638_s15 = sshra.s32 %s1077_s21, 4  ;;  %s1644_s24 = scalar_lea.hbm %s2017_s8, 16  ;;  %s1639_s15 = int_to_ptr.hbm [resolvable:$true] %s1638_s15 }
  0x4a   : > { %v411_v4 = vmul.f32 32.0, %v1425_v3  ;;  %vm415_vm1 = vweird.f32 %v1425_v3  ;;  %s1640_s1 = scalar_lea.hbm %s1639_s15, 8  ;;  %p1645_p12 = scmp.lt.s32.totalorder %s1639_s15, %s2017_s8 }
  0x4b   : > { %p1641_p1 = scmp.ne.s32.totalorder %s1639_s15, %s1640_s1  ;;  %p1646_p8 = scmp.lt.s32.totalorder %s1644_s24, %s1640_s1 }
  0x4c   : > { %v412_v5 = vsub.f32 1.0, %v411_v4 }
  0x4d   : > { %596 = vmatpush.bf16.xpose.msrb.mxu1 %v587_v24  ;;  %p1642_p3 = pnand %p1641_p1, %p1843_p13  ;;  %p1647_p7 = por %p1646_p8, %p1645_p12 }
  0x4e   : > { %v413_v6 = vmul.f32 %v1425_v3, %v412_v5  ;;  %621 = vmatpush.bf16.xpose.msrb.mxu2 %v612_v25 }
  0x4f   : > { %p1643_p4 = pneg %p1642_p3 }
  0x50   : > { %v414_v7 = vadd.f32 %v1425_v3, %v413_v6 }
  0x51   : > { %p1648_p9 = pnand %p1647_p7, %p1643_p4 }
  0x52   : > { %v416_v8 = vsel %vm415_vm1, %v1425_v3, %v414_v7 }
  0xb7   : > { %v409_v9 = vpop.xlane.xlu0 %408 }
  0xb8   : > { %v417_v10 = vmul.f32 %v416_v8, %v409_v9 }
  0xba   : > { %v418_v11 = vsub.f32 %v405_v0, %v417_v10 }
  0xbc   : > { %v419_v12 = vmul.f32 %v418_v11, %v418_v11 }
  0xbe   : > { %v420_v13 = vsel %vm406_vm0, %v419_v12, 0.0 }
  0xbf   : > { %421 = vadd.xlane.f32.xlu0 %v420_v13 }
 0x132   : > { %v422_v20 = vpop.xlane.xlu0 %421 }
 0x133   : > { %v423_v23 = vmul.f32 %v422_v20, %v416_v8  ;;  %v1313_v8 = vld [vmem:[#allocation7 + $0x10] sm:$0xff] }
 0x134   : > { %v760_v12 = vsel %vm406_vm0, %v1313_v8, 0 }
 0x135   : > { %v424_v26 = vadd.f32 1e-05, %v423_v23 }
 0x137   : > { %1426 = vrsqrt.f32 %v424_v26  ;;  %vm431_vm3 = vweird.f32 %v424_v26 }
 0x13d   : > { %v1427_v27 = vpop.eup %1426 }
 0x13e   : > { %v426_v28 = vmul.f32 %v1427_v27, %v424_v26  ;;  %vm432_vm2 = vweird.f32 %v1427_v27 }
 0x13f   : > { %vm433_vm4 = vmor %vm431_vm3, %vm432_vm2 }
 0x140   : > { %v427_v29 = vmul.f32 %v1427_v27, %v426_v28 }
 0x142   : > { %v428_v30 = vmul.f32 0.5, %v427_v29 }
 0x144   : > { %v429_v31 = vsub.f32 1.5, %v428_v30  ;;  %v1314_v30 = vld [vmem:[#allocation8 + $0x10] sm:$0xff] }
 0x146   : > { %v430_v32 = vmul.f32 %v1427_v27, %v429_v31  ;;  %v785_v31 = vsel %vm406_vm0, %v1314_v30, 0 }
 0x148   : > { %v434_v34 = vsel %vm433_vm4, %v1427_v27, %v430_v32 }
 0x149   : > { %v435_v36 = vmul.f32 %v434_v34, %v418_v11 }
 0x14b   : > { %v440_v37 = vmul.f32 %v1421_v33, %v435_v36  ;;  %v1312_v36 = vld [vmem:[#allocation11 + $0x8] sm:$0xff] }
 0x14d   : > { %v445_v38 = vadd.f32 %v1422_v35, %v440_v37  ;;  %v1315_v37 = vld [vmem:[#allocation10 + $0x10] sm:$0xff] }
 0x14f   : > { %v1906_v39 = vpack.c.bf16 %v445_v38, %v445_v38  ;;  %v810_v38 = vsel %vm406_vm0, %v1315_v37, 0 }
 0x151   : > { %1217 = vmatmul.msk.bf16.vlgmr.msra.gmra.mxu0 %vm406_vm0, %v1906_v39  ;;  %1222 = vmatmul.msk.bf16.vlgmr.msra.gmra.mxu1 %vm406_vm0, %v1906_v39 }
 0x152   : > { %1227 = vmatmul.msk.bf16.vlgmr.msra.gmra.mxu2 %vm406_vm0, %v1906_v39 }
 0x153   : > { %723 = vmatpush.bf16.msra.mxu2 %v1312_v36 }
 0x161   : > { %1234 = vmatmul.msk.bf16.vlgmr.msrb.gmra.mxu1 %vm406_vm0, %v1906_v39 }
 0x162   : > { %1239 = vmatmul.msk.bf16.vlgmr.msrb.gmra.mxu2 %vm406_vm0, %v1906_v39 }
 0x163   : > { %819 = vmatpush.bf16.xpose.msrb.mxu2 %v810_v38 }
 0x1ce   : > { %v469_v41 = vpop.f32.mrf.mxu0  ;;  %v493_v42 = vpop.f32.mrf.mxu1 }
 0x1cf   : > { %v497_v43 = vpack.c.bf16 %v493_v42, %v493_v42  ;;  %v473_v50 = vpack.c.bf16 %v469_v41, %v469_v41 }
 0x1d1   : > { %v527_v45 = vsel %vm522_vm5, %v497_v43, 0  ;;  %v912_v43 = vsel %vm406_vm0, %v1317_v40, 0 }
 0x1d2   : > { %536 = vmatpush.bf16.xpose.msra.mxu3 %v527_v45  ;;  %v1318_v45 = vld [vmem:[#allocation8 + $0x18] sm:$0xff] }
 0x1d5   : > { %v517_v46 = vpop.f32.mrf.mxu2 }
 0x1d6   : > { %v521_v47 = vpack.c.bf16 %v517_v46, %v517_v46  ;;  %v471_v48 = vpop.f32.mrf.mxu0  ;;  %v495_v49 = vpop.f32.mrf.mxu1 }
 0x1d7   : > { %v937_v48 = vsel %vm406_vm0, %v1318_v45, 0 }
 0x1d8   : > { %v560_v51 = vsel %vm558_vm6, %v521_v47, 0 }
 0x1d9   : > { %569 = vmatpush.bf16.msrb.mxu0 %v560_v51  ;;  %1228 = vmatmul.msk.bf16.vlgmr.msra.gmra.mxu3 %vm522_vm5, %v473_v50 }
 0x1da   : > { %646 = vmatpush.bf16.xpose.msrb.mxu3 %v637_v44 }
 0x1dd   : > { %v519_v52 = vpop.f32.mrf.mxu2 }
 0x1de   : > { %v598_v53 = vpop.f32.mrf.mxu1 }
 0x1df   : > { %v602_v13 = vpack.c.bf16 %v598_v53, %v598_v53 }
 0x1e2   : > { %745 = vmatpush.bf16.msra.mxu3 %v1308_v14 }
 0x1e5   : > { %v623_v54 = vpop.f32.mrf.mxu2 }
 0x1e6   : > { %v627_v55 = vpack.c.bf16 %v623_v54, %v623_v54  ;;  %v600_v56 = vpop.f32.mrf.mxu1  ;;  %v1316_v54 = vld [vmem:[#allocation11 + $0x10] sm:$0xff] }
 0x1e8   : > { %v657_v57 = vsel %vm522_vm5, %v627_v55, 0 }
 0x1e9   : > { %666 = vmatpush.bf16.xpose.msra.mxu0 %v657_v57  ;;  %1244 = vmatmul.msk.bf16.vlgmr.msrb.gmra.mxu3 %vm406_vm0, %v1906_v39 }
 0x1ed   : > { %v625_v58 = vpop.f32.mrf.mxu2 }
 0x25c   : > { %v538_v59 = vpop.f32.mrf.mxu3 }
 0x25d   : > { %v543_v60 = vsel %vm542_vm7, %v538_v59, -inf }
 0x25e   : > { %544 = vmax.xlane.f32.xlu1 %v543_v60 }
 0x264   : > { %v540_v61 = vpop.f32.mrf.mxu3 }
 0x26c   : > { %v648_v62 = vpop.f32.mrf.mxu3 }
 0x26d   : > { %v652_v63 = vpack.c.bf16 %v648_v62, %v648_v62 }
 0x26f   : > { %v688_v0 = vsel %vm558_vm6, %v652_v63, 0 }
 0x270   : > { %697 = vmatpush.bf16.msra.mxu1 %v688_v0 }
 0x274   : > { %v650_v1 = vpop.f32.mrf.mxu3  ;;  %794 = vmatpush.bf16.xpose.msrb.mxu1 %v785_v31 }
 0x2d1   : > { %v545_v2 = vpop.xlane.xlu1 %544 }
 0x2d2   : > { %v546_v3 = vsub.f32 %v538_v59, %v545_v2 }
 0x2d4   : > { %v547_v4 = vmul.f32 1.442695, %v546_v3 }
 0x2d6   : > { %1428 = vpow2.f32 %v547_v4 }
 0x2dc   : > { %v1429_v5 = vpop.eup %1428 }
 0x2dd   : > { %v549_v6 = vsel %vm542_vm7, %v1429_v5, 0.0 }
 0x2de   : > { %550 = vadd.xlane.f32.xlu1 %v549_v6 }
 0x351   : > { %v551_v7 = vpop.xlane.xlu1 %550 }
 0x352   : > { %1430 = vrcp.f32 %v551_v7 }
 0x358   : > { %v1431_v9 = vpop.eup %1430 }
 0x359   : > { %v553_v10 = vmul.f32 %v1431_v9, %v1429_v5  ;;  %v1319_v9 = vld [vmem:[#allocation10 + $0x18] sm:$0xff] }
 0x35b   : > { %v554_v11 = vpack.c.bf16 %v553_v10, %v553_v10  ;;  %v962_v10 = vsel %vm406_vm0, %v1319_v9, 0 }
 0x35d   : > { %1229 = vmatmul.msk.bf16.vlgmr.msrb.gmra.mxu0 %vm542_vm7, %v554_v11 }
 0x35e   : > { %769 = vmatpush.bf16.xpose.msrb.mxu0 %v760_v12 }
 0x36d   : > { %1245 = vmatmul.msk.bf16.vlgmr.msra.gmra.mxu0 %vm522_vm5, %v602_v13 }
 0x37d   : > { %1261 = vmatmul.msk.bf16.vlgmr.msrb.gmra.mxu0 %vm406_vm0, %v1906_v39 }
 0x3da   : > { %v571_v15 = vpop.f32.mrf.mxu0 }
 0x3db   : > { %v575_v16 = vpack.c.bf16 %v571_v15, %v571_v15 }
 0x3dd   : > { %1256 = vmatmul.msk.bf16.vlgmr.msra.gmra.mxu3 %vm522_vm5, %v575_v16 }
 0x3e2   : > { %v573_v17 = vpop.f32.mrf.mxu0 }
 0x3ea   : > { %v668_v18 = vpop.f32.mrf.mxu0 }
 0x3eb   : > { %v672_v19 = vsel %vm542_vm7, %v668_v18, -inf }
 0x3ec   : > { %673 = vmax.xlane.f32.xlu2 %v672_v19 }
 0x3f2   : > { %v670_v20 = vpop.f32.mrf.mxu0 }
 0x3fa   : > { %v771_v21 = vpop.f32.mrf.mxu0 }
 0x3fb   : > { %v775_v51 = vpack.c.bf16 %v771_v21, %v771_v21 }
 0x402   : > { %v773_v22 = vpop.f32.mrf.mxu0 }
 0x45f   : > { %v674_v23 = vpop.xlane.xlu2 %673 }
 0x460   : > { %v675_v24 = vsub.f32 %v668_v18, %v674_v23  ;;  %v1935_v25 = vpop.f32.mrf.mxu3 }
 0x462   : > { %v676_v26 = vmul.f32 1.442695, %v675_v24 }
 0x464   : > { %1432 = vpow2.f32 %v676_v26 }
 0x468   : > { %v749_v27 = vpop.f32.mrf.mxu3 }
 0x46a   : > { %v1433_v28 = vpop.eup %1432 }
 0x46b   : > { %v678_v29 = vsel %vm542_vm7, %v1433_v28, 0.0 }
 0x46c   : > { %679 = vadd.xlane.f32.xlu2 %v678_v29 }
 0x4df   : > { %v680_v32 = vpop.xlane.xlu2 %679 }
 0x4e0   : > { %1434 = vrcp.f32 %v680_v32 }
 0x4e6   : > { %v1435_v33 = vpop.eup %1434 }
 0x4e7   : > { %v682_v34 = vmul.f32 %v1435_v33, %v1433_v28 }
 0x4e9   : > { %v683_v35 = vpack.c.bf16 %v682_v34, %v682_v34 }
 0x4eb   : > { %1246 = vmatmul.msk.bf16.vlgmr.msra.gmra.mxu1 %vm542_vm7, %v683_v35  ;;  %v1320_v35 = vld [vmem:[#allocation11 + $0x18] sm:$0xff] }
 0x4ec   : > { %896 = vmatpush.bf16.msra.mxu1 %v1316_v54 }
 0x4fb   : > { %1266 = vmatmul.msk.bf16.vlgmr.msrb.gmra.mxu1 %vm406_vm0, %v1906_v39 }
 0x568   : > { %v699_v41 = vpop.f32.mrf.mxu1 }
 0x569   : > { %v703_v42 = vpack.c.bf16 %v699_v41, %v699_v41 }
 0x56b   : > { %1251 = vmatmul.msk.bf16.vlgmr.msra.gmra.mxu2 %vm522_vm5, %v703_v42 }
 0x56c   : > { %921 = vmatpush.bf16.xpose.msra.mxu2 %v912_v43  ;;  %v1423_v43 = vld [vmem:[%s2016_s7] ss:$0 sm:$0xff] }
 0x570   : > { %v701_v44 = vpop.f32.mrf.mxu1 }
 0x578   : > { %v796_v46 = vpop.f32.mrf.mxu1 }
 0x579   : > { %v800_v47 = vpack.c.bf16 %v796_v46, %v796_v46 }
 0x57b   : > { %v830_v49 = vsel %vm522_vm5, %v800_v47, 0  ;;  %1271 = vmatmul.msk.bf16.vlgmr.msrb.gmra.mxu2 %vm406_vm0, %v1906_v39 }
 0x57c   : > { %839 = vmatpush.bf16.xpose.msrb.mxu3 %v830_v49 }
 0x580   : > { %v798_v50 = vpop.f32.mrf.mxu1 }
 0x583   : > { %1272 = vmatmul.msk.bf16.vlgmr.msrb.gmra.mxu3 %vm522_vm5, %v775_v51 }
 0x584   : > { %946 = vmatpush.bf16.xpose.msra.mxu3 %v937_v48 }
 0x58b   : > { %1283 = vmatmul.msk.bf16.vlgmr.msra.gmra.mxu2 %vm406_vm0, %v1906_v39 }
 0x58c   : > { %1048 = vmatpush.bf16.msrb.mxu3 %v1320_v35 }
 0x593   : > { %1288 = vmatmul.msk.bf16.vlgmr.msra.gmra.mxu3 %vm406_vm0, %v1906_v39 }
 0x5ee   : > { %v725_v52 = vpop.f32.mrf.mxu2 }
 0x5ef   : > { %v748_v23 = vadd.f32 %v1935_v25, %v725_v52 }
 0x5f6   : > { %v727_v53 = vpop.f32.mrf.mxu2 }
 0x5fe   : > { %v821_v55 = vpop.f32.mrf.mxu2 }
 0x5ff   : > { %v825_v56 = vpack.c.bf16 %v821_v55, %v821_v55 }
 0x601   : > { %v861_v57 = vsel %vm558_vm6, %v825_v56, 0 }
 0x602   : > { %870 = vmatpush.bf16.msra.mxu0 %v861_v57 }
 0x606   : > { %v823_v58 = vpop.f32.mrf.mxu2  ;;  %v841_v59 = vpop.f32.mrf.mxu3  ;;  %971 = vmatpush.bf16.xpose.msrb.mxu0 %v962_v10 }
 0x607   : > { %v845_v60 = vsel %vm542_vm7, %v841_v59, -inf }
 0x608   : > { %846 = vmax.xlane.f32.xlu0 %v845_v60 }
 0x60e   : > { %v843_v61 = vpop.f32.mrf.mxu3  ;;  %v923_v62 = vpop.f32.mrf.mxu2 }
 0x60f   : > { %v927_v19 = vpack.c.bf16 %v923_v62, %v923_v62 }
 0x616   : > { %v925_v63 = vpop.f32.mrf.mxu2  ;;  %v948_v0 = vpop.f32.mrf.mxu3 }
 0x617   : > { %v952_v1 = vpack.c.bf16 %v948_v0, %v948_v0 }
 0x619   : > { %v982_v2 = vsel %vm522_vm5, %v952_v1, 0 }
 0x61a   : > { %991 = vmatpush.bf16.xpose.msrb.mxu1 %v982_v2 }
 0x61e   : > { %v950_v3 = vpop.f32.mrf.mxu3 }
 0x67b   : > { %v847_v4 = vpop.xlane.xlu0 %846 }
 0x67c   : > { %v848_v5 = vsub.f32 %v841_v59, %v847_v4 }
 0x67e   : > { %v849_v6 = vmul.f32 1.442695, %v848_v5 }
 0x680   : > { %1436 = vpow2.f32 %v849_v6 }
 0x686   : > { %v1437_v7 = vpop.eup %1436 }
 0x687   : > { %v851_v8 = vsel %vm542_vm7, %v1437_v7, 0.0 }
 0x688   : > { %852 = vadd.xlane.f32.xlu1 %v851_v8 }
 0x6fb   : > { %v853_v11 = vpop.xlane.xlu1 %852 }
 0x6fc   : > { %1438 = vrcp.f32 %v853_v11 }
 0x702   : > { %v1439_v12 = vpop.eup %1438 }
 0x703   : > { %v855_v13 = vmul.f32 %v1439_v12, %v1437_v7 }
 0x705   : > { %v856_v14 = vpack.c.bf16 %v855_v13, %v855_v13 }
 0x707   : > { %1273 = vmatmul.msk.bf16.vlgmr.msra.gmra.mxu0 %vm542_vm7, %v856_v14 }
 0x717   : > { %1293 = vmatmul.msk.bf16.vlgmr.msrb.gmra.mxu0 %vm406_vm0, %v1906_v39 }
 0x784   : > { %v872_v15 = vpop.f32.mrf.mxu0 }
 0x785   : > { %v876_v16 = vpack.c.bf16 %v872_v15, %v872_v15 }
 0x787   : > { %1278 = vmatmul.msk.bf16.vlgmr.msra.gmra.mxu1 %vm522_vm5, %v876_v16 }
 0x78c   : > { %v874_v17 = vpop.f32.mrf.mxu0 }
 0x794   : > { %v973_v18 = vpop.f32.mrf.mxu0 }
 0x795   : > { %v977_v20 = vpack.c.bf16 %v973_v18, %v973_v18 }
 0x797   : > { %v1013_v21 = vsel %vm558_vm6, %v977_v20, 0  ;;  %1294 = vmatmul.msk.bf16.vlgmr.msrb.gmra.mxu1 %vm522_vm5, %v927_v19 }
 0x798   : > { %1022 = vmatpush.bf16.msrb.mxu2 %v1013_v21 }
 0x79c   : > { %v975_v22 = vpop.f32.mrf.mxu0 }
 0x804   : > { %v898_v24 = vpop.f32.mrf.mxu1 }
 0x805   : > { %v902_v26 = vadd.f32 %v898_v24, %v748_v23 }
 0x80c   : > { %v900_v27 = vpop.f32.mrf.mxu1 }
 0x814   : > { %v993_v39 = vpop.f32.mrf.mxu1 }
 0x815   : > { %v997_v28 = vsel %vm542_vm7, %v993_v39, -inf }
 0x816   : > { %998 = vmax.xlane.f32.xlu2 %v997_v28 }
 0x81c   : > { %v995_v29 = vpop.f32.mrf.mxu1 }
 0x889   : > { %v999_v30 = vpop.xlane.xlu2 %998 }
 0x88a   : > { %v1000_v31 = vsub.f32 %v993_v39, %v999_v30 }
 0x88c   : > { %v1001_v32 = vmul.f32 1.442695, %v1000_v31 }
 0x88e   : > { %1440 = vpow2.f32 %v1001_v32 }
 0x894   : > { %v1441_v33 = vpop.eup %1440 }
 0x895   : > { %v1003_v34 = vsel %vm542_vm7, %v1441_v33, 0.0 }
 0x896   : > { %1004 = vadd.xlane.f32.xlu0 %v1003_v34 }
 0x909   : > { %v1005_v25 = vpop.xlane.xlu0 %1004 }
 0x90a   : > { %1442 = vrcp.f32 %v1005_v25 }
 0x910   : > { %v1443_v36 = vpop.eup %1442 }
 0x911   : > { %v1007_v37 = vmul.f32 %v1443_v36, %v1441_v33 }
 0x913   : > { %v1008_v38 = vpack.c.bf16 %v1007_v37, %v1007_v37 }
 0x915   : > { %1295 = vmatmul.msk.bf16.vlgmr.msrb.gmra.mxu2 %vm542_vm7, %v1008_v38 }
 0x998   : > { %v1024_v40 = vpop.f32.mrf.mxu2 }
 0x999   : > { %v1028_v41 = vpack.c.bf16 %v1024_v40, %v1024_v40 }
 0x99b   : > { %1300 = vmatmul.msk.bf16.vlgmr.msrb.gmra.mxu3 %vm522_vm5, %v1028_v41 }
 0x9a0   : > { %v1026_v42 = vpop.f32.mrf.mxu2 }
 0xa1e   : > { %v1050_v44 = vpop.f32.mrf.mxu3 }
 0xa1f   : > { %v1054_v45 = vadd.f32 %v1050_v44, %v902_v26 }
 0xa21   : > { %v1059_v46 = vadd.f32 %v1423_v43, %v1054_v45 }
 0xa23   : > { %1060 = vst.msk [vmem:[%s403_s11] sm:$0xff] %vm406_vm0, %v1059_v46 }
 0xa24   : > { %1651 = shalt.err (!%p1648_p9)
}
 0xa25   : > { %1343 = dma.vmem_to_hbm [thread:$0]  (%p1843_p13), %s1075_s20, 128, %s1077_s21, %s1062_s12  }
 0xa26   : > { %v1052_v47 = vpop.f32.mrf.mxu3 }
 0xa27 PF: > { %s1088_s26 = sand.u32 1, %s1690_s27   ;;  %p2028_p10 = scmp.ge.s32.totalorder %s1702_s30, 2 }
 0xa28   : > { %s1089_s10 = scalar_lea.sflag [#allocation4], %s1088_s26 }
 0xa29   : > { %p1366_p11 = pnand %p2028_p10, %p1848_p5 }
 0xa2b   : > { %p1367_p0 = pneg %p1366_p11 }
 0xa2d   : > { %1685 = dma.done.wait (%p1367_p0), %s1089_s10, 128  }
 0xa2e   : > { %1687 = vsyncadd (%p1367_p0), %s1089_s10, 4294967168  ;;  %p24_p2 = scmp.ge.s32.totalorder %s1823_s9, 4   ;;  %s2029_s27 = smov %s1694_s28 }
 0xa2f   : > { %s2030_s28 = smov %s1698_s29  ;;  %s2031_s29 = smov %s1835_s14 }
 0xa30   : > { %s2032_s30 = smov %s1823_s9  ;;  %26 = sbr.rel (!%p24_p2) target bundleno = 11 (0xb), region = 129 }
 0xa35   :  { %1095 = vsyncpa [#allocation3], 1 }
 0xa36   :  { %1097 = vsyncpa [#allocation3 + $0x1], 1 }
 0xa37   :  { %1098 = vsyncpa [#allocation6], 1 }
 0xa38   :  { %1099 = vsyncpa [#allocation9], 1 }
 0xa39   :  { %1100 = vsyncpa [#allocation12], 1 }
 0xa3a   :  { %1101 = vsyncpa [#allocation4], 1 }
 0xa3b   :  { %1103 = vsyncpa [#allocation4 + $0x1], 1 }

</bundles_post_ra>
